<compile_context>
chip_gen: v7x
topology: tpu7x:2x2x1
jax: 0.10.0
libtpu: 0.0.40
codegen_flags: <defaults>
</compile_context>

<pallas_src>
import functools

import jax
import jax.numpy as jnp
from jax.experimental import pallas as pl
from jax.experimental.pallas import tpu as pltpu

LANE = 128
_VMEM_BUDGET = 36 * 1024 * 1024   # target working-set bound used to size block_n


def _vmem_estimate(block_n, d, h_pad):
    """Rough VMEM working-set estimate (bytes) for a given tile size."""
    x_bufs = 2 * block_n * d * 4            # double-buffered f32 embedding block
    y_bufs = 2 * block_n * 4                # double-buffered label block
    w_bufs = 2 * (d * h_pad * 2) + 4 * (2 * h_pad * 4)   # bf16 w1 (x2) + b1/w2 f32
    interm = block_n * h_pad * 4 + 8 * block_n * 4       # h + logits/scores/diff rows
    return x_bufs + y_bufs + w_bufs + interm + (1 << 20)  # + 1 MiB slack


def _discriminator_kernel(x_ref, y_ref, w1_ref, b1_ref, w2_ref, b2_ref,
                          loss_ref, acc_ref, *, block_n, tiles_per_split,
                          n_valid, matmul_dtype):
    c = pl.program_id(0)   # batch split        (core-parallel on v7x)
    i = pl.program_id(1)   # tile within split  (reduction, "arbitrary")

    @pl.when(i == 0)
    def _init():
        acc_ref[...] = jnp.zeros_like(acc_ref)

    # ---- Linear 1 on the MXU: cast the streamed f32 block to bf16 here, ----
    # ---- right before the matmul; accumulate in f32.                    ----
    xb = x_ref[...].astype(matmul_dtype)
    h = jnp.dot(xb, w1_ref[...], preferred_element_type=jnp.float32) + b1_ref[...]

    # ---- LeakyReLU(0.2): valid as max(h, 0.2*h) since 0 < slope < 1 ----
    h = jnp.maximum(h, 0.2 * h)

    # ---- Dropout -> identity (eval mode) ----

    # ---- Linear 2: logits = w2_row . h^T -> lane-dense (1, block_n) row ----
    logits = jnp.einsum("oh,nh->on", w2_ref[...], h,
                        preferred_element_type=jnp.float32) + b2_ref[0, 0]

    # ---- Sigmoid: EUP exp + approximate reciprocal ----
    scores = pl.reciprocal(1.0 + jnp.exp(-logits), approx=True)

    # ---- masked squared error (handles ragged tail and clamped OOB tiles) ----
    row0 = (c * tiles_per_split + i) * block_n
    lane_ids = jax.lax.broadcasted_iota(jnp.int32, (1, block_n), 1)
    valid = (row0 + lane_ids) < n_valid
    diff = jnp.where(valid, scores - y_ref[0], 0.0)   # false branch constant: no NaN leak
    acc_ref[...] += jnp.sum(diff * diff, axis=1, keepdims=True)

    @pl.when(i == tiles_per_split - 1)
    def _finalize():
        # Partial mean contribution of this split; the wrapper sums the splits.
        loss_ref[0] = acc_ref[...] * (1.0 / n_valid)


def discriminator_loss(embeddings, labels, params, *, block_n=2048,
                       num_splits=1, core_parallel=False,
                       matmul_dtype=jnp.bfloat16):
    """embeddings: (N, D) f32 (or bf16), labels: (N,) -> scalar MSE loss (eval mode).

    num_splits=1 is right for single-TensorCore chips (v5e / v6e).
    On v7x use num_splits=2, core_parallel=True to shard the batch across the
    two TensorCores.
    """
    w1, b1, w2, b2 = params            # (D,H), (1,H), (1,H), (1,1)
    n, d = embeddings.shape
    hidden = w1.shape[1]
    b1 = b1.reshape(1, hidden)
    w2 = w2.reshape(1, hidden)
    b2 = b2.reshape(1, 1)

    # Pad hidden dim to a lane multiple (semantics preserving: padded w2 = 0).
    h_pad = max(LANE, ((hidden + LANE - 1) // LANE) * LANE)
    if h_pad != hidden:
        w1 = jnp.pad(w1, ((0, 0), (0, h_pad - hidden)))
        b1 = jnp.pad(b1, ((0, 0), (0, h_pad - hidden)))
        w2 = jnp.pad(w2, ((0, 0), (0, h_pad - hidden)))

    # ---- Tile sizing: clamp to the batch, keep sublane-aligned, fit VMEM ----
    if block_n >= n:
        block_n = n                       # single full-extent tile
    else:
        block_n = max(8, (block_n // 8) * 8)
    while block_n > 128 and _vmem_estimate(block_n, d, h_pad) > _VMEM_BUDGET:
        block_n = max(128, ((block_n // 2) // 8) * 8)

    num_splits = max(1, min(num_splits, pl.cdiv(n, block_n)))
    tiles_per_split = pl.cdiv(n, num_splits * block_n)
    num_tiles = num_splits * tiles_per_split
    max_blk = pl.cdiv(n, block_n) - 1     # last x block whose start is in-bounds

    # Embeddings stay un-padded / un-cast in HBM.  Only the tiny labels array
    # is padded so it reshapes into lane-dense (1, block_n) blocks.
    y = jnp.pad(labels.astype(jnp.float32), (0, num_tiles * block_n - n))
    y = y.reshape(num_tiles, 1, block_n)

    w1 = w1.astype(matmul_dtype)
    b1 = b1.astype(jnp.float32)
    w2 = w2.astype(jnp.float32)
    b2 = b2.astype(jnp.float32)

    kernel = functools.partial(
        _discriminator_kernel, block_n=block_n,
        tiles_per_split=tiles_per_split, n_valid=n, matmul_dtype=matmul_dtype)

    def x_map(c, i):
        # Clamp so a split's trailing (fully out-of-range) tiles just re-read
        # the last valid block; the in-kernel mask zeroes their contribution.
        return (jnp.minimum(c * tiles_per_split + i, max_blk), 0)

    def y_map(c, i):
        return (c * tiles_per_split + i, 0, 0)

    grid_spec = pltpu.PrefetchScalarGridSpec(
        num_scalar_prefetch=0,
        grid=(num_splits, tiles_per_split),
        in_specs=[
            # streamed per tile (double-buffered by the BlockSpec pipeline)
            pl.BlockSpec((block_n, d), x_map),
            pl.BlockSpec((1, 1, block_n), y_map),
            # weights: constant index_map -> VMEM resident, no re-DMA per step
            pl.BlockSpec((d, h_pad), lambda c, i: (0, 0)),
            pl.BlockSpec((1, h_pad), lambda c, i: (0, 0)),
            pl.BlockSpec((1, h_pad), lambda c, i: (0, 0)),
            # b2: single scalar, keep it in SMEM
            pl.BlockSpec(memory_space=pltpu.MemorySpace.SMEM),
        ],
        out_specs=pl.BlockSpec((1, 1, 1), lambda c, i: (c, 0, 0)),
        scratch_shapes=[pltpu.VMEM((1, 1), jnp.float32)],
    )

    if num_splits > 1:
        split_sem = pltpu.CORE_PARALLEL if core_parallel else pltpu.PARALLEL
    else:
        split_sem = pltpu.ARBITRARY

    vmem_limit = int(min(48 * 1024 * 1024,
                         max(32 * 1024 * 1024,
                             int(_vmem_estimate(block_n, d, h_pad) * 1.25))))

    partial_means = pl.pallas_call(
        kernel,
        grid_spec=grid_spec,
        out_shape=jax.ShapeDtypeStruct((num_splits, 1, 1), jnp.float32),
        compiler_params=pltpu.CompilerParams(
            dimension_semantics=(split_sem, pltpu.ARBITRARY),
            vmem_limit_bytes=vmem_limit,
        ),
    )(embeddings, y, w1, b1, w2, b2)

    return jnp.sum(partial_means)


def init_params(key, embed_dim):
    """Matches Discriminator.init_weights: Normal(mean=0, std=0.01) for W and b."""
    hidden = embed_dim // 2
    k1, k2, k3, k4 = jax.random.split(key, 4)
    w1 = 0.01 * jax.random.normal(k1, (embed_dim, hidden), jnp.float32)  # layer1.weight.T
    b1 = 0.01 * jax.random.normal(k2, (1, hidden), jnp.float32)
    w2 = 0.01 * jax.random.normal(k3, (1, hidden), jnp.float32)          # layer2.weight (PyTorch layout)
    b2 = 0.01 * jax.random.normal(k4, (1, 1), jnp.float32)
    return (w1, b1, w2, b2)


def reference_loss(embeddings, labels, params):
    """Pure-JAX f32 reference mirroring the PyTorch forward (eval-mode dropout)."""
    w1, b1, w2, b2 = params
    h = embeddings @ w1 + b1
    h = jnp.where(h > 0, h, 0.2 * h)
    s = jax.nn.sigmoid(h @ w2.T + b2).squeeze()
    return jnp.mean((s - labels) ** 2)


if __name__ == "__main__":
    batch = 300        # not a multiple of the tile -> exercises ragged handling
    embed_dim = 256    # hidden = 128 (lane-aligned)

    key = jax.random.PRNGKey(0)
    kx, ky, kp = jax.random.split(key, 3)

    embeddings = jax.random.normal(kx, (batch, embed_dim), jnp.float32)
    labels = jax.random.bernoulli(ky, 0.5, (batch,)).astype(jnp.float32)
    params = init_params(kp, embed_dim)

    ref = reference_loss(embeddings, labels, params)

    # Default config: block_n auto-clamps to the batch, single split (v5e/v6e).
    loss = discriminator_loss(embeddings, labels, params)
    loss = jax.block_until_ready(loss)
    assert jnp.allclose(loss, ref, atol=5e-3, rtol=5e-3), (loss, ref)

    # Small-tile multi-split config: exercises the partial last block, the
    # clamped fully-out-of-range tile, and the per-split partial sums.
    loss2 = discriminator_loss(embeddings, labels, params,
                               block_n=128, num_splits=2)
    loss2 = jax.block_until_ready(loss2)
    assert jnp.allclose(loss2, ref, atol=5e-3, rtol=5e-3), (loss2, ref)

    print("KERNEL_OK")
</pallas_src>

<mosaic_0001>
module attributes {stable_mosaic.version = 11 : i64} {
  func.func @_discriminator_kernel(%arg0: i32, %arg1: i32, %arg2: memref<300x256xf32, #tpu.memory_space<vmem>>, %arg3: memref<1x1x300xf32, #tpu.memory_space<vmem>>, %arg4: memref<256x128xbf16, #tpu.memory_space<vmem>>, %arg5: memref<1x128xf32, #tpu.memory_space<vmem>>, %arg6: memref<1x128xf32, #tpu.memory_space<vmem>>, %arg7: memref<1x1xf32, #tpu.memory_space<smem>>, %arg8: memref<1x1x1xf32, #tpu.memory_space<vmem>>, %arg9: memref<1x1xf32, #tpu.memory_space<vmem>>) attributes {dimension_semantics = [#tpu.dimension_semantics<arbitrary>, #tpu.dimension_semantics<arbitrary>], iteration_bounds = array<i64: 1, 1>, scalar_prefetch = 0 : i64, scratch_operands = 1 : i64, tpu.core_type = #tpu.core_type<tc>, window_params = [{transform_indices = @transform_0, window_bounds = array<i64: 300, 256>}, {transform_indices = @transform_1, window_bounds = array<i64: 1, 1, 300>}, {pipeline_mode = #tpu.pipeline_mode<synchronous>, transform_indices = @transform_2, window_bounds = array<i64: 256, 128>}, {pipeline_mode = #tpu.pipeline_mode<synchronous>, transform_indices = @transform_3, window_bounds = array<i64: 1, 128>}, {pipeline_mode = #tpu.pipeline_mode<synchronous>, transform_indices = @transform_4, window_bounds = array<i64: 1, 128>}, {transform_indices = @transform_5, window_bounds = array<i64: 1, 1>}, {transform_indices = @transform_6, window_bounds = array<i64: 1, 1, 1>}]} {
    %c0_i32 = arith.constant 0 : i32
    %0 = arith.cmpi eq, %arg1, %c0_i32 : i32
    %1 = arith.extui %0 : i1 to i32
    %c0_i32_0 = arith.constant 0 : i32
    %2 = arith.cmpi ne, %1, %c0_i32_0 : i32
    scf.if %2 {
      %cst_26 = arith.constant 0.000000e+00 : f32
      %46 = vector.broadcast %cst_26 : f32 to vector<1x1xf32>
      %c0_27 = arith.constant 0 : index
      %c0_28 = arith.constant 0 : index
      %47 = vector.load %arg9[%c0_27, %c0_28] : memref<1x1xf32, #tpu.memory_space<vmem>>, vector<1x1xf32>
      tpu.vector_store %arg9[%c0_27, %c0_28], %46 {strides = array<i32>} : memref<1x1xf32, #tpu.memory_space<vmem>>, vector<1x1xf32>,
    } else {
    }
    %c0 = arith.constant 0 : index
    %c0_1 = arith.constant 0 : index
    %3 = vector.load %arg2[%c0, %c0_1] : memref<300x256xf32, #tpu.memory_space<vmem>>, vector<300x256xf32>
    %4 = arith.truncf %3 : vector<300x256xf32> to vector<300x256xbf16>
    %c0_2 = arith.constant 0 : index
    %c0_3 = arith.constant 0 : index
    %5 = vector.load %arg4[%c0_2, %c0_3] : memref<256x128xbf16, #tpu.memory_space<vmem>>, vector<256x128xbf16>
    %cst = arith.constant dense<0.000000e+00> : vector<300x128xf32>
    %6 = tpu.matmul %4, %5, %cst {dimension_numbers = #tpu.dot_dimension_numbers<[1], [0], [0], [1], [0, 0, 1, 1], [], []>} : vector<300x256xbf16>, vector<256x128xbf16>, vector<300x128xf32> -> vector<300x128xf32>
    %c0_4 = arith.constant 0 : index
    %c0_5 = arith.constant 0 : index
    %7 = vector.load %arg5[%c0_4, %c0_5] : memref<1x128xf32, #tpu.memory_space<vmem>>, vector<1x128xf32>
    %8 = vector.broadcast %7 : vector<1x128xf32> to vector<300x128xf32>
    %9 = arith.addf %6, %8 : vector<300x128xf32>
    %cst_6 = arith.constant 2.000000e-01 : f32
    %10 = vector.broadcast %cst_6 : f32 to vector<300x128xf32>
    %11 = arith.mulf %10, %9 : vector<300x128xf32>
    %12 = arith.maximumf %9, %11 : vector<300x128xf32>
    %c0_7 = arith.constant 0 : index
    %c0_8 = arith.constant 0 : index
    %13 = vector.load %arg6[%c0_7, %c0_8] : memref<1x128xf32, #tpu.memory_space<vmem>>, vector<1x128xf32>
    "tpu.trace_start"() <{level = 10 : i32, message = "oh,nh->on"}> : () -> ()
    %cst_9 = arith.constant dense<0.000000e+00> : vector<1x300xf32>
    %14 = tpu.matmul %13, %12, %cst_9 {dimension_numbers = #tpu.dot_dimension_numbers<[1], [1], [0], [0], [0, 0, 1, 0], [], []>} : vector<1x128xf32>, vector<300x128xf32>, vector<1x300xf32> -> vector<1x300xf32>
    "tpu.trace_stop"() : () -> ()
    %c0_10 = arith.constant 0 : index
    %c0_11 = arith.constant 0 : index
    %15 = memref.load %arg7[%c0_10, %c0_11] : memref<1x1xf32, #tpu.memory_space<smem>>
    %16 = vector.broadcast %15 : f32 to vector<1x300xf32>
    %17 = arith.addf %14, %16 : vector<1x300xf32>
    %cst_12 = arith.constant 0.000000e+00 : f32
    %18 = vector.broadcast %cst_12 : f32 to vector<1x300xf32>
    %19 = arith.subf %18, %17 : vector<1x300xf32>
    %20 = math.exp %19 : vector<1x300xf32>
    %cst_13 = arith.constant 1.000000e+00 : f32
    %21 = vector.broadcast %cst_13 : f32 to vector<1x300xf32>
    %22 = arith.addf %21, %20 : vector<1x300xf32>
    %23 = tpu.reciprocal %22 {approx = true} : vector<1x300xf32> -> vector<1x300xf32>
    %c1_i32 = arith.constant 1 : i32
    %24 = arith.muli %arg0, %c1_i32 : i32
    %25 = arith.addi %24, %arg1 : i32
    %c300_i32 = arith.constant 300 : i32
    %26 = arith.muli %25, %c300_i32 : i32
    %27 = tpu.iota {dimensions = array<i32: 1>} : vector<1x300xi32>
    %28 = vector.broadcast %26 : i32 to vector<1x300xi32>
    %29 = arith.addi %28, %27 : vector<1x300xi32>
    %c300_i32_14 = arith.constant 300 : i32
    %30 = vector.broadcast %c300_i32_14 : i32 to vector<1x300xi32>
    %31 = arith.cmpi slt, %29, %30 : vector<1x300xi32>
    %c0_15 = arith.constant 0 : index
    %c0_16 = arith.constant 0 : index
    %c0_17 = arith.constant 0 : index
    %32 = vector.load %arg3[%c0_15, %c0_16, %c0_17] : memref<1x1x300xf32, #tpu.memory_space<vmem>>, vector<1x1x300xf32>
    %33 = vector.shape_cast %32 : vector<1x1x300xf32> to vector<1x300xf32>
    %34 = arith.subf %23, %33 : vector<1x300xf32>
    %cst_18 = arith.constant 0.000000e+00 : f32
    %35 = vector.broadcast %cst_18 : f32 to vector<1x300xf32>
    %36 = arith.select %31, %34, %35 : vector<1x300xi1>, vector<1x300xf32>
    %c0_19 = arith.constant 0 : index
    %c0_20 = arith.constant 0 : index
    %37 = vector.load %arg9[%c0_19, %c0_20] : memref<1x1xf32, #tpu.memory_space<vmem>>, vector<1x1xf32>
    %38 = arith.mulf %36, %36 : vector<1x300xf32>
    %cst_21 = arith.constant dense<0.000000e+00> : vector<1xf32>
    %39 = vector.multi_reduction <add>, %38, %cst_21 [1] : vector<1x300xf32> to vector<1xf32>
    %40 = vector.shape_cast %39 : vector<1xf32> to vector<1x1xf32>
    %41 = arith.addf %37, %40 : vector<1x1xf32>
    %c0_22 = arith.constant 0 : index
    %c0_23 = arith.constant 0 : index
    %42 = vector.load %arg9[%c0_22, %c0_23] : memref<1x1xf32, #tpu.memory_space<vmem>>, vector<1x1xf32>
    tpu.vector_store %arg9[%c0_22, %c0_23], %41 {strides = array<i32>} : memref<1x1xf32, #tpu.memory_space<vmem>>, vector<1x1xf32>,
    %c0_i32_24 = arith.constant 0 : i32
    %43 = arith.cmpi eq, %arg1, %c0_i32_24 : i32
    %44 = arith.extui %43 : i1 to i32
    %c0_i32_25 = arith.constant 0 : i32
    %45 = arith.cmpi ne, %44, %c0_i32_25 : i32
    scf.if %45 {
      %c0_26 = arith.constant 0 : index
      %c0_27 = arith.constant 0 : index
      %46 = vector.load %arg9[%c0_26, %c0_27] : memref<1x1xf32, #tpu.memory_space<vmem>>, vector<1x1xf32>
      %cst_28 = arith.constant 0.00333333341 : f32
      %47 = vector.broadcast %cst_28 : f32 to vector<1x1xf32>
      %48 = arith.mulf %46, %47 : vector<1x1xf32>
      %c0_29 = arith.constant 0 : index
      %c0_30 = arith.constant 0 : index
      %c0_31 = arith.constant 0 : index
      %49 = vector.load %arg8[%c0_29, %c0_30, %c0_31] : memref<1x1x1xf32, #tpu.memory_space<vmem>>, vector<1x1x1xf32>
      %50 = vector.shape_cast %49 : vector<1x1x1xf32> to vector<1x1xf32>
      %51 = vector.shape_cast %48 : vector<1x1xf32> to vector<1x1x1xf32>
      tpu.vector_store %arg8[%c0_29, %c0_30, %c0_31], %51 {strides = array<i32>} : memref<1x1x1xf32, #tpu.memory_space<vmem>>, vector<1x1x1xf32>,
    } else {
    }
    return
  }
  func.func @transform_0(%arg0: i32, %arg1: i32) -> (i32, i32) {
    %c1_i32 = arith.constant 1 : i32
    %0 = arith.muli %arg0, %c1_i32 : i32
    %1 = arith.addi %0, %arg1 : i32
    %c0_i32 = arith.constant 0 : i32
    %2 = arith.minsi %1, %c0_i32 : i32
    %c0_i32_0 = arith.constant 0 : i32
    %c0_i32_1 = arith.constant 0 : i32
    return %2, %c0_i32_0 : i32, i32
  }
  func.func @transform_1(%arg0: i32, %arg1: i32) -> (i32, i32, i32) {
    %c1_i32 = arith.constant 1 : i32
    %0 = arith.muli %arg0, %c1_i32 : i32
    %1 = arith.addi %0, %arg1 : i32
    %c0_i32 = arith.constant 0 : i32
    %c0_i32_0 = arith.constant 0 : i32
    %c0_i32_1 = arith.constant 0 : i32
    return %1, %c0_i32, %c0_i32_0 : i32, i32, i32
  }
  func.func @transform_2(%arg0: i32, %arg1: i32) -> (i32, i32) {
    %c0_i32 = arith.constant 0 : i32
    %c0_i32_0 = arith.constant 0 : i32
    %c0_i32_1 = arith.constant 0 : i32
    return %c0_i32, %c0_i32_0 : i32, i32
  }
  func.func @transform_3(%arg0: i32, %arg1: i32) -> (i32, i32) {
    %c0_i32 = arith.constant 0 : i32
    %c0_i32_0 = arith.constant 0 : i32
    %c0_i32_1 = arith.constant 0 : i32
    return %c0_i32, %c0_i32_0 : i32, i32
  }
  func.func @transform_4(%arg0: i32, %arg1: i32) -> (i32, i32) {
    %c0_i32 = arith.constant 0 : i32
    %c0_i32_0 = arith.constant 0 : i32
    %c0_i32_1 = arith.constant 0 : i32
    return %c0_i32, %c0_i32_0 : i32, i32
  }
  func.func @transform_5(%arg0: i32, %arg1: i32) -> (i32, i32) {
    %c0_i32 = arith.constant 0 : i32
    %c0_i32_0 = arith.constant 0 : i32
    %c0_i32_1 = arith.constant 0 : i32
    return %c0_i32, %c0_i32_0 : i32, i32
  }
  func.func @transform_6(%arg0: i32, %arg1: i32) -> (i32, i32, i32) {
    %c0_i32 = arith.constant 0 : i32
    %c0_i32_0 = arith.constant 0 : i32
    %c0_i32_1 = arith.constant 0 : i32
    return %arg0, %c0_i32, %c0_i32_0 : i32, i32, i32
  }
}

</mosaic_0001>

<bundles_post_ra>
// kernel: tpu_custom_call.1
= control target key start
LH: loop header
LB: loop body
LE: loop exit
PB: predicated region body
PF: predicated region fallthrough
CT: control target
= control target key end

     0   :  { %12 = vsyncpa [#allocation5], 0  ;;  %s1230_s0 = inlined_call_operand.hbm [shape: f32[300,256], index: 0, kind: input, shape index: {}]   ;;  %s1231_s1 = inlined_call_operand.vmem [shape: f32[1,1,300], index: 1, kind: input, shape index: {}]   ;;  %s1232_s2 = inlined_call_operand.hbm [shape: bf16[256,128], index: 2, kind: input, shape index: {}]   ;;  %s1233_s3 = inlined_call_operand.vmem [shape: f32[1,128], index: 3, kind: input, shape index: {}]   ;;  %s1234_s4 = inlined_call_operand.vmem [shape: f32[1,128], index: 4, kind: input, shape index: {}]   ;;  %s1235_s5 = inlined_call_operand.<no memory space> [shape: f32[1,1], index: 5, kind: input, shape index: {}]   ;;  %s1236_s6 = inlined_call_operand.hbm [shape: f32[1,1,1], index: 6, kind: output, shape index: {}]  }
   0x1   :  { %13 = vsyncpa [#allocation8], 0 }
   0x2   :  { %14 = vsyncpa [#allocation6], 0  ;;  %s1064_s21 = smov [#allocation4]   ;;  %s992_s25 = scalar_lea.hbm %s1230_s0, 9728 }
   0x3   :  { %s27_s22 = sshll.u32 %s1064_s21, 4  ;;  %p993_p0 = scmp.ne.s32.totalorder %s1230_s0, %s992_s25  ;;  %s28_s22 = int_to_ptr.vmem [resolvable:$true] %s27_s22 }
   0x4   :  { %p996_p1 = scmp.lt.u32.totalorder %s992_s25, %s1230_s0 }
   0x6   :  { %p998_p2 = pnand %p996_p1, %p993_p0 }
   0x8   :  { %1001 = shalt.err (!%p998_p2)
}
   0x9   :  { %s1002_s30 = scalar_lea.vmem %s28_s22, 9728  ;;  %p1007_p4 = scmp.lt.s32.totalorder %s28_s22, %s28_s22 }
   0xa   :  { %p1003_p3 = scmp.ne.s32.totalorder %s28_s22, %s1002_s30  ;;  %p1008_p5 = scmp.lt.s32.totalorder %s1002_s30, %s1002_s30 }
   0xc   :  { %p1009_p6 = por %p1008_p5, %p1007_p4 }
   0xe   :  { %p1010_p7 = pnand %p1009_p6, %p1003_p3 }
  0x10   :  { %1013 = shalt.err (!%p1010_p7)
}
  0x11   :  { %s1065_s7 = smov 256   ;;  %s1066_s8 = smov 16  }
  0x12   :  { %33 = dma.hbm_to_vmem [thread:$0]  %s1230_s0, 9728, %s28_s22, [#allocation5], %s1065_s7, %s1065_s7, %s1066_s8  }
  0x13   :  { %s1067_s11 = smov [#allocation7]   ;;  %s1014_s15 = scalar_lea.hbm %s1232_s2, 2048 }
  0x14   :  { %s47_s12 = sshll.u32 %s1067_s11, 4  ;;  %p1015_p8 = scmp.ne.s32.totalorder %s1232_s2, %s1014_s15  ;;  %s48_s12 = int_to_ptr.vmem [resolvable:$true] %s47_s12 }
  0x15   :  { %p1018_p9 = scmp.lt.u32.totalorder %s1014_s15, %s1232_s2 }
  0x17   :  { %p1020_p10 = pnand %p1018_p9, %p1015_p8 }
  0x19   :  { %1023 = shalt.err (!%p1020_p10)
}
  0x1a   :  { %s1024_s20 = scalar_lea.vmem %s48_s12, 2048  ;;  %p1029_p12 = scmp.lt.s32.totalorder %s48_s12, %s48_s12 }
  0x1b   :  { %p1025_p11 = scmp.ne.s32.totalorder %s48_s12, %s1024_s20  ;;  %p1030_p13 = scmp.lt.s32.totalorder %s1024_s20, %s1024_s20 }
  0x1d   :  { %p1031_p0 = por %p1030_p13, %p1029_p12 }
  0x1f   :  { %p1032_p1 = pnand %p1031_p0, %p1025_p11 }
  0x21   :  { %1035 = shalt.err (!%p1032_p1)
}
  0x22   :  { %s1068_s0 = smov 64   ;;  %s1069_s21 = smov 4  }
  0x23   :  { %53 = dma.hbm_to_vmem [thread:$0]  %s1232_s2, 2048, %s48_s12, [#allocation8], %s1068_s0, %s1068_s0, %s1069_s21  }
  0x24   :  { %1058 = dma.done.wait [#allocation5], 9728  }
  0x25   :  { %1059 = vsyncadd [#allocation5], 4294957568 }
  0x26   :  { %1060 = dma.done.wait [#allocation8], 2048  }
  0x27   :  { %1061 = vsyncadd [#allocation8], 4294965248  ;;  %v1070_v0 = vmov 0   ;;  %v964_v1 = vld [vmem:[#allocation7] sm:$0xff]   ;;  %v965_v2 = vld [vmem:[#allocation7 + $0x8] sm:$0xff]   ;;  %vm1072_vm0 = vmmov 0  }
  0x28   :  { %337 = vmatprep.subr.bf16.mxu0 %v1070_v0  ;;  %v966_v3 = vld [vmem:[#allocation7 + $0x10] sm:$0xff]   ;;  %v967_v4 = vld [vmem:[#allocation7 + $0x18] sm:$0xff]   ;;  %v968_v5 = vld [vmem:[#allocation7 + $0x20] sm:$0xff]   ;;  %vm86_vm1 = vcmask 0   ;;  %vm797_vm2 = vcmask 1040384   ;;  %vm801_vm4 = vcmask 352256  }
  0x29   :  { %338 = vmatpush1.bf16.msra.mxu0 %v964_v1  ;;  %v89_v6 = vld [vmem:[#allocation4 + $0x8] sm:$0xff]  ;;  %v91_v7 = vld [vmem:[#allocation4 + $0x18] sm:$0xff]  ;;  %v970_v10 = vld [vmem:[#allocation7 + $0x30] sm:$0xff]  }
  0x2a   :  { %339 = vmatprep.subr.bf16.mxu0 %v1070_v0  ;;  %v165_v8 = vpack.c.bf16 %v91_v7, %v89_v6  ;;  %v969_v9 = vld [vmem:[#allocation7 + $0x28] sm:$0xff]   ;;  %v971_v11 = vld [vmem:[#allocation7 + $0x38] sm:$0xff]   ;;  %v972_v12 = vld [vmem:[#allocation7 + $0x40] sm:$0xff]  }
  0x2b   :  { %v973_v13 = vld [vmem:[#allocation7 + $0x48] sm:$0xff]   ;;  %v974_v14 = vld [vmem:[#allocation7 + $0x50] sm:$0xff]   ;;  %v975_v15 = vld [vmem:[#allocation7 + $0x58] sm:$0xff]  }
  0x2c   :  { %369 = vmatprep.mubr.bf16.mxu0 %v165_v8  ;;  %v976_v16 = vld [vmem:[#allocation7 + $0x60] sm:$0xff]   ;;  %v977_v17 = vld [vmem:[#allocation7 + $0x68] sm:$0xff]   ;;  %v978_v18 = vld [vmem:[#allocation7 + $0x70] sm:$0xff]  }
  0x2d   :  { %340 = vmatpush1.bf16.msra.mxu0 %v965_v2  ;;  %v979_v19 = vld [vmem:[#allocation7 + $0x78] sm:$0xff]   ;;  %v88_v20 = vld [vmem:[#allocation4] sm:$0xff]  ;;  %v90_v21 = vld [vmem:[#allocation4 + $0x10] sm:$0xff] }
  0x2e   :  { %341 = vmatprep.subr.bf16.mxu0 %v1070_v0  ;;  %v93_v22 = vld [vmem:[#allocation4 + $0x28] sm:$0xff]  ;;  %v95_v23 = vld [vmem:[#allocation4 + $0x38] sm:$0xff]  ;;  %v164_v24 = vpack.c.bf16 %v90_v21, %v88_v20  ;;  %v92_v26 = vld [vmem:[#allocation4 + $0x20] sm:$0xff] }
  0x2f   :  { %v167_v25 = vpack.c.bf16 %v95_v23, %v93_v22  ;;  %v94_v27 = vld [vmem:[#allocation4 + $0x30] sm:$0xff]  ;;  %v97_v28 = vld [vmem:[#allocation4 + $0x48] sm:$0xff]  ;;  %v99_v29 = vld [vmem:[#allocation4 + $0x58] sm:$0xff] }
  0x30   :  { %v166_v30 = vpack.c.bf16 %v94_v27, %v92_v26  ;;  %v169_v31 = vpack.c.bf16 %v99_v29, %v97_v28  ;;  %v96_v32 = vld [vmem:[#allocation4 + $0x40] sm:$0xff]  ;;  %v98_v33 = vld [vmem:[#allocation4 + $0x50] sm:$0xff]  ;;  %v101_v34 = vld [vmem:[#allocation4 + $0x68] sm:$0xff] }
  0x31   :  { %342 = vmatpush1.bf16.msra.mxu0 %v966_v3  ;;  %v103_v35 = vld [vmem:[#allocation4 + $0x78] sm:$0xff]  ;;  %v168_v36 = vpack.c.bf16 %v98_v33, %v96_v32  ;;  %v100_v38 = vld [vmem:[#allocation4 + $0x60] sm:$0xff]  ;;  %v102_v39 = vld [vmem:[#allocation4 + $0x70] sm:$0xff] }
  0x32   :  { %343 = vmatprep.subr.bf16.mxu0 %v1070_v0  ;;  %v171_v37 = vpack.c.bf16 %v103_v35, %v101_v34  ;;  %v105_v40 = vld [vmem:[#allocation4 + $0x88] sm:$0xff]  ;;  %v107_v41 = vld [vmem:[#allocation4 + $0x98] sm:$0xff]  ;;  %v170_v42 = vpack.c.bf16 %v102_v39, %v100_v38  ;;  %v104_v44 = vld [vmem:[#allocation4 + $0x80] sm:$0xff] }
  0x33   :  { %v173_v43 = vpack.c.bf16 %v107_v41, %v105_v40  ;;  %v106_v45 = vld [vmem:[#allocation4 + $0x90] sm:$0xff]  ;;  %v109_v46 = vld [vmem:[#allocation4 + $0xa8] sm:$0xff]  ;;  %v111_v47 = vld [vmem:[#allocation4 + $0xb8] sm:$0xff] }
  0x34   :  { %v172_v48 = vpack.c.bf16 %v106_v45, %v104_v44  ;;  %v175_v49 = vpack.c.bf16 %v111_v47, %v109_v46  ;;  %v108_v50 = vld [vmem:[#allocation4 + $0xa0] sm:$0xff]  ;;  %v110_v51 = vld [vmem:[#allocation4 + $0xb0] sm:$0xff]  ;;  %v113_v52 = vld [vmem:[#allocation4 + $0xc8] sm:$0xff] }
  0x35   :  { %344 = vmatpush1.bf16.msra.mxu0 %v967_v4  ;;  %v115_v53 = vld [vmem:[#allocation4 + $0xd8] sm:$0xff]  ;;  %v174_v54 = vpack.c.bf16 %v110_v51, %v108_v50  ;;  %v112_v56 = vld [vmem:[#allocation4 + $0xc0] sm:$0xff]  ;;  %v114_v57 = vld [vmem:[#allocation4 + $0xd0] sm:$0xff] }
  0x36   :  { %345 = vmatprep.subr.bf16.mxu0 %v1070_v0  ;;  %v177_v55 = vpack.c.bf16 %v115_v53, %v113_v52  ;;  %v117_v58 = vld [vmem:[#allocation4 + $0xe8] sm:$0xff]  ;;  %v119_v59 = vld [vmem:[#allocation4 + $0xf8] sm:$0xff]  ;;  %v176_v60 = vpack.c.bf16 %v114_v57, %v112_v56  ;;  %v116_v62 = vld [vmem:[#allocation4 + $0xe0] sm:$0xff] }
  0x37   :  { %v179_v61 = vpack.c.bf16 %v119_v59, %v117_v58  ;;  %v118_v63 = vld [vmem:[#allocation4 + $0xf0] sm:$0xff]  ;;  %v123_v1 = vld [vmem:[#allocation4 + $0x118] sm:$0xff]  ;;  %v120_v4 = vld [vmem:[#allocation4 + $0x100] sm:$0xff] }
  0x38   :  { %v178_v2 = vpack.c.bf16 %v118_v63, %v116_v62  ;;  %v125_v6 = vld [vmem:[#allocation4 + $0x128] sm:$0xff]  ;;  %v127_v7 = vld [vmem:[#allocation4 + $0x138] sm:$0xff]  ;;  %v132_v22 = vld [vmem:[#allocation4 + $0x160] sm:$0xff] }
  0x39   :  { %346 = vmatpush1.bf16.msra.mxu0 %v968_v5  ;;  %v122_v5 = vld [vmem:[#allocation4 + $0x110] sm:$0xff]  ;;  %v136_v28 = vld [vmem:[#allocation4 + $0x180] sm:$0xff] }
  0x3a   :  { %347 = vmatprep.subr.bf16.mxu0 %v1070_v0  ;;  %v180_v8 = vpack.c.bf16 %v122_v5, %v120_v4  ;;  %v134_v23 = vld [vmem:[#allocation4 + $0x170] sm:$0xff]  ;;  %v140_v34 = vld [vmem:[#allocation4 + $0x1a0] sm:$0xff] }
  0x3b   :  { %v186_v26 = vpack.c.bf16 %v134_v23, %v132_v22  ;;  %v138_v29 = vld [vmem:[#allocation4 + $0x190] sm:$0xff]  ;;  %v144_v40 = vld [vmem:[#allocation4 + $0x1c0] sm:$0xff] }
  0x3c   :  { %v188_v32 = vpack.c.bf16 %v138_v29, %v136_v28  ;;  %v142_v35 = vld [vmem:[#allocation4 + $0x1b0] sm:$0xff]  ;;  %v148_v46 = vld [vmem:[#allocation4 + $0x1e0] sm:$0xff] }
  0x3d   :  { %348 = vmatpush1.bf16.msra.mxu0 %v969_v9  ;;  %v183_v9 = vpack.c.bf16 %v127_v7, %v125_v6  ;;  %v190_v38 = vpack.c.bf16 %v142_v35, %v140_v34  ;;  %v146_v41 = vld [vmem:[#allocation4 + $0x1d0] sm:$0xff]  ;;  %v152_v52 = vld [vmem:[#allocation4 + $0x200] sm:$0xff] }
  0x3e   :  { %349 = vmatprep.subr.bf16.mxu0 %v1070_v0  ;;  %v192_v44 = vpack.c.bf16 %v146_v41, %v144_v40  ;;  %v150_v47 = vld [vmem:[#allocation4 + $0x1f0] sm:$0xff]  ;;  %v156_v58 = vld [vmem:[#allocation4 + $0x220] sm:$0xff] }
  0x3f   :  { %v194_v50 = vpack.c.bf16 %v150_v47, %v148_v46  ;;  %v154_v53 = vld [vmem:[#allocation4 + $0x210] sm:$0xff] }
  0x40   :  { %v196_v56 = vpack.c.bf16 %v154_v53, %v152_v52  ;;  %v158_v59 = vld [vmem:[#allocation4 + $0x230] sm:$0xff] }
  0x41   :  { %350 = vmatpush1.bf16.msra.mxu0 %v970_v10  ;;  %v124_v10 = vld [vmem:[#allocation4 + $0x120] sm:$0xff]  ;;  %v198_v62 = vpack.c.bf16 %v158_v59, %v156_v58 }
  0x42   :  { %351 = vmatprep.subr.bf16.mxu0 %v1070_v0 }
  0x45   :  { %352 = vmatpush1.bf16.msra.mxu0 %v971_v11  ;;  %v126_v11 = vld [vmem:[#allocation4 + $0x130] sm:$0xff] }
  0x46   :  { %353 = vmatprep.subr.bf16.mxu0 %v1070_v0 }
  0x49   :  { %354 = vmatpush1.bf16.msra.mxu0 %v972_v12  ;;  %v129_v12 = vld [vmem:[#allocation4 + $0x148] sm:$0xff] }
  0x4a   :  { %355 = vmatprep.subr.bf16.mxu0 %v1070_v0 }
  0x4d   :  { %356 = vmatpush1.bf16.msra.mxu0 %v973_v13  ;;  %v131_v13 = vld [vmem:[#allocation4 + $0x158] sm:$0xff] }
  0x4e   :  { %357 = vmatprep.subr.bf16.mxu0 %v1070_v0 }
  0x51   :  { %358 = vmatpush1.bf16.msra.mxu0 %v974_v14  ;;  %v182_v14 = vpack.c.bf16 %v126_v11, %v124_v10 }
  0x52   :  { %359 = vmatprep.subr.bf16.mxu0 %v1070_v0 }
  0x55   :  { %360 = vmatpush1.bf16.msra.mxu0 %v975_v15  ;;  %v185_v15 = vpack.c.bf16 %v131_v13, %v129_v12 }
  0x56   :  { %361 = vmatprep.subr.bf16.mxu0 %v1070_v0 }
  0x59   :  { %362 = vmatpush1.bf16.msra.mxu0 %v976_v16  ;;  %v128_v16 = vld [vmem:[#allocation4 + $0x140] sm:$0xff] }
  0x5a   :  { %363 = vmatprep.subr.bf16.mxu0 %v1070_v0 }
  0x5d   :  { %364 = vmatpush1.bf16.msra.mxu0 %v977_v17  ;;  %v130_v17 = vld [vmem:[#allocation4 + $0x150] sm:$0xff] }
  0x5e   :  { %365 = vmatprep.subr.bf16.mxu0 %v1070_v0  ;;  %v184_v20 = vpack.c.bf16 %v130_v17, %v128_v16 }
  0x61   :  { %366 = vmatpush1.bf16.msra.mxu0 %v978_v18  ;;  %v133_v18 = vld [vmem:[#allocation4 + $0x168] sm:$0xff] }
  0x62   :  { %367 = vmatprep.subr.bf16.mxu0 %v1070_v0  ;;  %v121_v0 = vld [vmem:[#allocation4 + $0x108] sm:$0xff] }
  0x63   :  { %v181_v3 = vpack.c.bf16 %v123_v1, %v121_v0  ;;  %v160_v0 = vld [vmem:[#allocation4 + $0x240] sm:$0xff]  ;;  %v162_v1 = vld [vmem:[#allocation4 + $0x250] sm:$0xf] }
  0x65   :  { %368 = vmatpush1.bf16.msra.mxu0 %v979_v19  ;;  %v135_v19 = vld [vmem:[#allocation4 + $0x178] sm:$0xff] }
  0x66   :  { %v187_v21 = vpack.c.bf16 %v135_v19, %v133_v18  ;;  %v1147_v18 = vld [vmem:[%s1234_s4] sm:$0x1] }
  0x67   :  { %888 = vmatprep.mubr.f32.mxu1 %v1147_v18 }
  0x68   :  { %370 = vmatmul.mubr.bf16.vlgmr.msra.gmra.mrb[0].mxu0 %v164_v24  ;;  %v137_v24 = vld [vmem:[#allocation4 + $0x188] sm:$0xff] }
  0x69   :  { %377 = vmatprep.mubr.bf16.mxu0 %v167_v25  ;;  %v139_v25 = vld [vmem:[#allocation4 + $0x198] sm:$0xff] }
  0x6a   :  { %v189_v27 = vpack.c.bf16 %v139_v25, %v137_v24 }
  0x70   :  { %378 = vmatmul.mubr.bf16.gmra.mrb[4].mxu0 %v166_v30  ;;  %v141_v30 = vld [vmem:[#allocation4 + $0x1a8] sm:$0xff] }
  0x71   :  { %385 = vmatprep.mubr.bf16.mxu0 %v169_v31  ;;  %v143_v31 = vld [vmem:[#allocation4 + $0x1b8] sm:$0xff] }
  0x72   :  { %v191_v33 = vpack.c.bf16 %v143_v31, %v141_v30 }
  0x78   :  { %386 = vmatmul.mubr.bf16.gmra.mrb[8].mxu0 %v168_v36  ;;  %v145_v36 = vld [vmem:[#allocation4 + $0x1c8] sm:$0xff] }
  0x79   :  { %393 = vmatprep.mubr.bf16.mxu0 %v171_v37  ;;  %v147_v37 = vld [vmem:[#allocation4 + $0x1d8] sm:$0xff] }
  0x7a   :  { %v193_v39 = vpack.c.bf16 %v147_v37, %v145_v36 }
  0x80   :  { %394 = vmatmul.mubr.bf16.gmra.mrb[12].mxu0 %v170_v42  ;;  %v149_v42 = vld [vmem:[#allocation4 + $0x1e8] sm:$0xff] }
  0x81   :  { %401 = vmatprep.mubr.bf16.mxu0 %v173_v43  ;;  %v151_v43 = vld [vmem:[#allocation4 + $0x1f8] sm:$0xff] }
  0x82   :  { %v195_v45 = vpack.c.bf16 %v151_v43, %v149_v42 }
  0x88   :  { %402 = vmatmul.mubr.bf16.gmra.mrb[16].mxu0 %v172_v48  ;;  %v153_v48 = vld [vmem:[#allocation4 + $0x208] sm:$0xff] }
  0x89   :  { %409 = vmatprep.mubr.bf16.mxu0 %v175_v49  ;;  %v155_v49 = vld [vmem:[#allocation4 + $0x218] sm:$0xff] }
  0x8a   :  { %v197_v51 = vpack.c.bf16 %v155_v49, %v153_v48 }
  0x90   :  { %410 = vmatmul.mubr.bf16.gmra.mrb[20].mxu0 %v174_v54  ;;  %v157_v54 = vld [vmem:[#allocation4 + $0x228] sm:$0xff] }
  0x91   :  { %417 = vmatprep.mubr.bf16.mxu0 %v177_v55  ;;  %v159_v55 = vld [vmem:[#allocation4 + $0x238] sm:$0xff] }
  0x92   :  { %v199_v57 = vpack.c.bf16 %v159_v55, %v157_v54 }
  0x98   :  { %418 = vmatmul.mubr.bf16.gmra.mrb[24].mxu0 %v176_v60  ;;  %v161_v60 = vld [vmem:[#allocation4 + $0x248] sm:$0xff] }
  0x99   :  { %425 = vmatprep.mubr.bf16.mxu0 %v179_v61  ;;  %v163_v61 = vld [vmem:[#allocation4 + $0x258] sm:$0xf] }
  0x9a   :  { %v201_v63 = vpack.c.bf16 %v163_v61, %v161_v60 }
  0xa0   :  { %426 = vmatmul.mubr.bf16.gmra.mrb[28].mxu0 %v178_v2  ;;  %v200_v2 = vpack.c.bf16 %v162_v1, %v160_v0 }
  0xa1   :  { %433 = vmatprep.mubr.bf16.mxu0 %v181_v3  ;;  %v1137_v3 = vld [vmem:[%s1233_s3] ss:$0 sm:$0xff] }
  0xa8   :  { %434 = vmatmul.mubr.bf16.gmra.mrb[32].mxu0 %v180_v8 }
  0xa9   :  { %441 = vmatprep.mubr.bf16.mxu0 %v183_v9 }
  0xb0   :  { %442 = vmatmul.mubr.bf16.gmra.mrb[36].mxu0 %v182_v14 }
  0xb1   :  { %449 = vmatprep.mubr.bf16.mxu0 %v185_v15 }
  0xb8   :  { %450 = vmatmul.mubr.bf16.gmra.mrb[40].mxu0 %v184_v20 }
  0xb9   :  { %457 = vmatprep.mubr.bf16.mxu0 %v187_v21 }
  0xc0   :  { %458 = vmatmul.mubr.bf16.gmra.mrb[44].mxu0 %v186_v26 }
  0xc1   :  { %465 = vmatprep.mubr.bf16.mxu0 %v189_v27 }
  0xc8   :  { %466 = vmatmul.mubr.bf16.gmra.mrb[48].mxu0 %v188_v32 }
  0xc9   :  { %473 = vmatprep.mubr.bf16.mxu0 %v191_v33 }
  0xd0   :  { %474 = vmatmul.mubr.bf16.gmra.mrb[52].mxu0 %v190_v38 }
  0xd1   :  { %481 = vmatprep.mubr.bf16.mxu0 %v193_v39 }
  0xd8   :  { %482 = vmatmul.mubr.bf16.gmra.mrb[56].mxu0 %v192_v44 }
  0xd9   :  { %489 = vmatprep.mubr.bf16.mxu0 %v195_v45 }
  0xe0   :  { %490 = vmatmul.mubr.bf16.gmra.mrb[60].mxu0 %v194_v50 }
  0xe1   :  { %497 = vmatprep.mubr.bf16.mxu0 %v197_v51 }
  0xe8   :  { %498 = vmatmul.mubr.bf16.gmra.mrb[64].mxu0 %v196_v56 }
  0xe9   :  { %505 = vmatprep.mubr.bf16.mxu0 %v199_v57 }
  0xf0   :  { %506 = vmatmul.mubr.bf16.gmra.mrb[68].mxu0 %v198_v62 }
  0xf1   :  { %513 = vmatprep.mubr.bf16.mxu0 %v201_v63 }
  0xf8   :  { %514 = vmatmul.mubr.bf16.gmra.mrb[72].mxu0 %v200_v2 }
 0x13b   :  { %v371_v4 = vpop.f32.mrb[0].mxu0 }
 0x13c   :  { %v372_v5 = vadd.f32 %v1137_v3, %v371_v4  ;;  %v373_v6 = vpop.f32.mrb[1].mxu0 }
 0x13d   :  { %v374_v7 = vpop.f32.mrb[2].mxu0 }
 0x13e   :  { %v522_v8 = vmul.f32 0.2, %v372_v5  ;;  %v375_v9 = vadd.f32 %v1137_v3, %v374_v7  ;;  %v376_v10 = vpop.f32.mrb[3].mxu0 }
 0x140   :  { %v523_v11 = vmul.f32 0.2, %v375_v9  ;;  %v560_v12 = vmax.f32 %v372_v5, %v522_v8 }
 0x142   :  { %v561_v13 = vmax.f32 %v375_v9, %v523_v11 }
 0x143   :  { %v379_v14 = vpop.f32.mrb[4].mxu0 }
 0x144   :  { %v380_v15 = vadd.f32 %v1137_v3, %v379_v14  ;;  %v381_v16 = vpop.f32.mrb[5].mxu0  ;;  %v1142_v17 = vpack.c.bf16 %v561_v13, %v560_v12 }
 0x145   :  { %v382_v19 = vpop.f32.mrb[6].mxu0 }
 0x146   :  { %v524_v20 = vmul.f32 0.2, %v380_v15  ;;  %v383_v21 = vadd.f32 %v1137_v3, %v382_v19  ;;  %v384_v22 = vpop.f32.mrb[7].mxu0 }
 0x148   :  { %v525_v23 = vmul.f32 0.2, %v383_v21  ;;  %v562_v24 = vmax.f32 %v380_v15, %v524_v20 }
 0x14a   :  { %v563_v25 = vmax.f32 %v383_v21, %v525_v23 }
 0x14b   :  { %v387_v26 = vpop.f32.mrb[8].mxu0 }
 0x14c   :  { %v388_v27 = vadd.f32 %v1137_v3, %v387_v26  ;;  %v389_v28 = vpop.f32.mrb[9].mxu0  ;;  %v1152_v29 = vpack.c.bf16 %v563_v25, %v562_v24 }
 0x14d   :  { %v390_v30 = vpop.f32.mrb[10].mxu0 }
 0x14e   :  { %v526_v31 = vmul.f32 0.2, %v388_v27  ;;  %v391_v32 = vadd.f32 %v1137_v3, %v390_v30  ;;  %v392_v33 = vpop.f32.mrb[11].mxu0 }
 0x150   :  { %v527_v34 = vmul.f32 0.2, %v391_v32  ;;  %v564_v35 = vmax.f32 %v388_v27, %v526_v31 }
 0x152   :  { %v565_v36 = vmax.f32 %v391_v32, %v527_v34 }
 0x153   :  { %v395_v37 = vpop.f32.mrb[12].mxu0 }
 0x154   :  { %v396_v38 = vadd.f32 %v1137_v3, %v395_v37  ;;  %v397_v39 = vpop.f32.mrb[13].mxu0  ;;  %v1156_v40 = vpack.c.bf16 %v565_v36, %v564_v35 }
 0x155   :  { %v398_v41 = vpop.f32.mrb[14].mxu0 }
 0x156   :  { %v528_v42 = vmul.f32 0.2, %v396_v38  ;;  %v399_v43 = vadd.f32 %v1137_v3, %v398_v41  ;;  %v400_v44 = vpop.f32.mrb[15].mxu0 }
 0x158   :  { %v529_v45 = vmul.f32 0.2, %v399_v43  ;;  %v566_v46 = vmax.f32 %v396_v38, %v528_v42 }
 0x15a   :  { %v567_v47 = vmax.f32 %v399_v43, %v529_v45 }
 0x15b   :  { %v403_v48 = vpop.f32.mrb[16].mxu0 }
 0x15c   :  { %v404_v49 = vadd.f32 %v1137_v3, %v403_v48  ;;  %v405_v50 = vpop.f32.mrb[17].mxu0  ;;  %v1160_v51 = vpack.c.bf16 %v567_v47, %v566_v46 }
 0x15d   :  { %v406_v52 = vpop.f32.mrb[18].mxu0 }
 0x15e   :  { %v530_v53 = vmul.f32 0.2, %v404_v49  ;;  %v407_v54 = vadd.f32 %v1137_v3, %v406_v52  ;;  %v408_v55 = vpop.f32.mrb[19].mxu0 }
 0x160   :  { %v531_v56 = vmul.f32 0.2, %v407_v54  ;;  %v568_v57 = vmax.f32 %v404_v49, %v530_v53 }
 0x162   :  { %v569_v58 = vmax.f32 %v407_v54, %v531_v56 }
 0x163   :  { %v411_v59 = vpop.f32.mrb[20].mxu0 }
 0x164   :  { %v412_v60 = vadd.f32 %v1137_v3, %v411_v59  ;;  %v413_v61 = vpop.f32.mrb[21].mxu0  ;;  %v1164_v62 = vpack.c.bf16 %v569_v58, %v568_v57 }
 0x165   :  { %v414_v63 = vpop.f32.mrb[22].mxu0 }
 0x166   :  { %v532_v0 = vmul.f32 0.2, %v412_v60  ;;  %v415_v1 = vadd.f32 %v1137_v3, %v414_v63  ;;  %v416_v2 = vpop.f32.mrb[23].mxu0 }
 0x168   :  { %v533_v4 = vmul.f32 0.2, %v415_v1  ;;  %v570_v5 = vmax.f32 %v412_v60, %v532_v0 }
 0x16a   :  { %v571_v6 = vmax.f32 %v415_v1, %v533_v4 }
 0x16b   :  { %v419_v7 = vpop.f32.mrb[24].mxu0 }
 0x16c   :  { %v420_v8 = vadd.f32 %v1137_v3, %v419_v7  ;;  %v421_v9 = vpop.f32.mrb[25].mxu0  ;;  %v1168_v10 = vpack.c.bf16 %v571_v6, %v570_v5 }
 0x16d   :  { %v422_v11 = vpop.f32.mrb[26].mxu0 }
 0x16e   :  { %v534_v12 = vmul.f32 0.2, %v420_v8  ;;  %v423_v13 = vadd.f32 %v1137_v3, %v422_v11  ;;  %v424_v14 = vpop.f32.mrb[27].mxu0 }
 0x170   :  { %v535_v15 = vmul.f32 0.2, %v423_v13  ;;  %v572_v16 = vmax.f32 %v420_v8, %v534_v12 }
 0x172   :  { %v573_v19 = vmax.f32 %v423_v13, %v535_v15 }
 0x173   :  { %v427_v20 = vpop.f32.mrb[28].mxu0 }
 0x174   :  { %v428_v21 = vadd.f32 %v1137_v3, %v427_v20  ;;  %v429_v22 = vpop.f32.mrb[29].mxu0  ;;  %v1172_v23 = vpack.c.bf16 %v573_v19, %v572_v16 }
 0x175   :  { %v430_v24 = vpop.f32.mrb[30].mxu0 }
 0x176   :  { %v536_v25 = vmul.f32 0.2, %v428_v21  ;;  %v431_v26 = vadd.f32 %v1137_v3, %v430_v24  ;;  %v432_v27 = vpop.f32.mrb[31].mxu0 }
 0x178   :  { %v537_v28 = vmul.f32 0.2, %v431_v26  ;;  %v574_v30 = vmax.f32 %v428_v21, %v536_v25 }
 0x17a   :  { %v575_v31 = vmax.f32 %v431_v26, %v537_v28 }
 0x17b   :  { %v435_v32 = vpop.f32.mrb[32].mxu0 }
 0x17c   :  { %v436_v33 = vadd.f32 %v1137_v3, %v435_v32  ;;  %v437_v34 = vpop.f32.mrb[33].mxu0  ;;  %v1176_v35 = vpack.c.bf16 %v575_v31, %v574_v30 }
 0x17d   :  { %v438_v36 = vpop.f32.mrb[34].mxu0 }
 0x17e   :  { %v538_v37 = vmul.f32 0.2, %v436_v33  ;;  %v439_v38 = vadd.f32 %v1137_v3, %v438_v36  ;;  %v440_v39 = vpop.f32.mrb[35].mxu0 }
 0x180   :  { %v539_v41 = vmul.f32 0.2, %v439_v38  ;;  %v576_v42 = vmax.f32 %v436_v33, %v538_v37 }
 0x182   :  { %v577_v43 = vmax.f32 %v439_v38, %v539_v41 }
 0x183   :  { %v443_v44 = vpop.f32.mrb[36].mxu0 }
 0x184   :  { %v444_v45 = vadd.f32 %v1137_v3, %v443_v44  ;;  %v445_v46 = vpop.f32.mrb[37].mxu0  ;;  %v912_v47 = vpack.c.bf16 %v577_v43, %v576_v42 }
 0x185   :  { %v446_v48 = vpop.f32.mrb[38].mxu0 }
 0x186   :  { %v540_v49 = vmul.f32 0.2, %v444_v45  ;;  %v447_v50 = vadd.f32 %v1137_v3, %v446_v48  ;;  %v448_v52 = vpop.f32.mrb[39].mxu0  ;;  %913 = vmatprep.subr.bf16.mxu1 %v912_v47 }
 0x187   :  { %915 = vmatpush3.bf16.xpose.msra.mxu1 %v1142_v17 }
 0x188   :  { %v541_v53 = vmul.f32 0.2, %v447_v50  ;;  %v578_v54 = vmax.f32 %v444_v45, %v540_v49 }
 0x18a   :  { %v579_v55 = vmax.f32 %v447_v50, %v541_v53 }
 0x18b   :  { %v451_v56 = vpop.f32.mrb[40].mxu0 }
 0x18c   :  { %v452_v57 = vadd.f32 %v1137_v3, %v451_v56  ;;  %v453_v58 = vpop.f32.mrb[41].mxu0  ;;  %v916_v59 = vpack.c.bf16 %v579_v55, %v578_v54 }
 0x18d   :  { %v454_v60 = vpop.f32.mrb[42].mxu0 }
 0x18e   :  { %v542_v61 = vmul.f32 0.2, %v452_v57  ;;  %v455_v63 = vadd.f32 %v1137_v3, %v454_v60  ;;  %v456_v0 = vpop.f32.mrb[43].mxu0  ;;  %917 = vmatprep.subr.bf16.mxu1 %v916_v59 }
 0x18f   :  { %919 = vmatpush3.bf16.xpose.msra.mxu1 %v1152_v29 }
 0x190   :  { %v543_v1 = vmul.f32 0.2, %v455_v63  ;;  %v580_v2 = vmax.f32 %v452_v57, %v542_v61 }
 0x192   :  { %v581_v4 = vmax.f32 %v455_v63, %v543_v1 }
 0x193   :  { %v459_v17 = vpop.f32.mrb[44].mxu0 }
 0x194   :  { %v460_v5 = vadd.f32 %v1137_v3, %v459_v17  ;;  %v461_v6 = vpop.f32.mrb[45].mxu0  ;;  %v920_v7 = vpack.c.bf16 %v581_v4, %v580_v2 }
 0x195   :  { %v462_v8 = vpop.f32.mrb[46].mxu0 }
 0x196   :  { %v544_v9 = vmul.f32 0.2, %v460_v5  ;;  %v463_v11 = vadd.f32 %v1137_v3, %v462_v8  ;;  %v464_v12 = vpop.f32.mrb[47].mxu0  ;;  %921 = vmatprep.subr.bf16.mxu1 %v920_v7  ;;  %v1071_v8 = vmov 0.0|0.0  }
 0x197   :  { %923 = vmatpush3.bf16.xpose.msra.mxu1 %v1156_v40 }
 0x198   :  { %v545_v13 = vmul.f32 0.2, %v463_v11  ;;  %v582_v14 = vmax.f32 %v460_v5, %v544_v9 }
 0x19a   :  { %v583_v15 = vmax.f32 %v463_v11, %v545_v13 }
 0x19b   :  { %v467_v29 = vpop.f32.mrb[48].mxu0 }
 0x19c   :  { %v468_v16 = vadd.f32 %v1137_v3, %v467_v29  ;;  %v469_v19 = vpop.f32.mrb[49].mxu0  ;;  %v924_v20 = vpack.c.bf16 %v583_v15, %v582_v14 }
 0x19d   :  { %v470_v21 = vpop.f32.mrb[50].mxu0 }
 0x19e   :  { %v546_v22 = vmul.f32 0.2, %v468_v16  ;;  %v471_v24 = vadd.f32 %v1137_v3, %v470_v21  ;;  %v472_v25 = vpop.f32.mrb[51].mxu0  ;;  %925 = vmatprep.subr.bf16.mxu1 %v924_v20 }
 0x19f   :  { %927 = vmatpush3.bf16.xpose.msra.mxu1 %v1160_v51 }
 0x1a0   :  { %v547_v26 = vmul.f32 0.2, %v471_v24  ;;  %v584_v27 = vmax.f32 %v468_v16, %v546_v22 }
 0x1a2   :  { %v585_v28 = vmax.f32 %v471_v24, %v547_v26 }
 0x1a3   :  { %v475_v40 = vpop.f32.mrb[52].mxu0 }
 0x1a4   :  { %v476_v30 = vadd.f32 %v1137_v3, %v475_v40  ;;  %v477_v31 = vpop.f32.mrb[53].mxu0  ;;  %v928_v32 = vpack.c.bf16 %v585_v28, %v584_v27 }
 0x1a5   :  { %v478_v33 = vpop.f32.mrb[54].mxu0 }
 0x1a6   :  { %v548_v34 = vmul.f32 0.2, %v476_v30  ;;  %v479_v36 = vadd.f32 %v1137_v3, %v478_v33  ;;  %v480_v37 = vpop.f32.mrb[55].mxu0  ;;  %929 = vmatprep.subr.bf16.mxu1 %v928_v32 }
 0x1a7   :  { %931 = vmatpush3.bf16.xpose.msra.mxu1 %v1164_v62  ;;  %v600_v37 = vstv %s1235_s5 }
 0x1a8   :  { %v549_v38 = vmul.f32 0.2, %v479_v36  ;;  %v586_v39 = vmax.f32 %v476_v30, %v548_v34 }
 0x1aa   :  { %v587_v41 = vmax.f32 %v479_v36, %v549_v38 }
 0x1ab   :  { %v483_v51 = vpop.f32.mrb[56].mxu0 }
 0x1ac   :  { %v484_v42 = vadd.f32 %v1137_v3, %v483_v51  ;;  %v485_v43 = vpop.f32.mrb[57].mxu0  ;;  %v932_v44 = vpack.c.bf16 %v587_v41, %v586_v39 }
 0x1ad   :  { %v486_v45 = vpop.f32.mrb[58].mxu0 }
 0x1ae   :  { %v550_v46 = vmul.f32 0.2, %v484_v42  ;;  %v487_v47 = vadd.f32 %v1137_v3, %v486_v45  ;;  %v488_v48 = vpop.f32.mrb[59].mxu0  ;;  %933 = vmatprep.subr.bf16.mxu1 %v932_v44  ;;  %v759_v45 = vlaneseq }
 0x1af   :  { %935 = vmatpush3.bf16.xpose.msra.mxu1 %v1168_v10 }
 0x1b0   :  { %v551_v49 = vmul.f32 0.2, %v487_v47  ;;  %v588_v50 = vmax.f32 %v484_v42, %v550_v46 }
 0x1b2   :  { %v589_v52 = vmax.f32 %v487_v47, %v551_v49  ;;  %v773_v49 = vshrl.u32 %v759_v45, 7 }
 0x1b3   :  { %v491_v62 = vpop.f32.mrb[60].mxu0 }
 0x1b4   :  { %v492_v53 = vadd.f32 %v1137_v3, %v491_v62  ;;  %v493_v54 = vpop.f32.mrb[61].mxu0  ;;  %v936_v55 = vpack.c.bf16 %v589_v52, %v588_v50  ;;  %v774_v50 = vsub.s32 0, %v773_v49  ;;  %v770_v62 = vld [vmem:[%s1231_s1] sm:$0x7]  ;;  %s1074_s1 = smov [#allocation9]  }
 0x1b5   :  { %v494_v56 = vpop.f32.mrb[62].mxu0  ;;  %s821_s28 = sshll.u32 %s1074_s1, 4  ;;  %s822_s28 = int_to_ptr.vmem [resolvable:$true] %s821_s28 }
 0x1b6   :  { %v552_v57 = vmul.f32 0.2, %v492_v53  ;;  %v495_v58 = vadd.f32 %v1137_v3, %v494_v56  ;;  %v496_v59 = vpop.f32.mrb[63].mxu0  ;;  %937 = vmatprep.subr.bf16.mxu1 %v936_v55  ;;  %s1036_s29 = scalar_lea.vmem %s822_s28, 16  ;;  %s1040_s30 = scalar_lea.vmem %s822_s28, 32 }
 0x1b7   :  { %939 = vmatpush3.bf16.xpose.msra.mxu1 %v1172_v23  ;;  %p1037_p2 = scmp.ne.s32.totalorder %s822_s28, %s1036_s29  ;;  %p1041_p3 = scmp.lt.s32.totalorder %s822_s28, %s822_s28 }
 0x1b8   :  { %v553_v60 = vmul.f32 0.2, %v495_v58  ;;  %v590_v61 = vmax.f32 %v492_v53, %v552_v57  ;;  %v778_v53 = vsub.s32 1, %v773_v49  ;;  %v775_v57 = vrot.slane %v770_v62, %v774_v50  ;;  %p1042_p4 = scmp.lt.s32.totalorder %s1040_s30, %s1036_s29 }
 0x1ba   :  { %v591_v63 = vmax.f32 %v495_v58, %v553_v60  ;;  %v779_v58 = vrot.slane %v770_v62, %v778_v53  ;;  %p1043_p5 = por %p1042_p4, %p1041_p3 }
 0x1bb   :  { %v499_v10 = vpop.f32.mrb[64].mxu0 }
 0x1bc   :  { %v500_v0 = vadd.f32 %v1137_v3, %v499_v10  ;;  %v501_v1 = vpop.f32.mrb[65].mxu0  ;;  %v940_v2 = vpack.c.bf16 %v591_v63, %v590_v61  ;;  %p1044_p6 = pnand %p1043_p5, %p1037_p2 }
 0x1bd   :  { %v502_v4 = vpop.f32.mrb[66].mxu0 }
 0x1be   :  { %v554_v17 = vmul.f32 0.2, %v500_v0  ;;  %v503_v5 = vadd.f32 %v1137_v3, %v502_v4  ;;  %v504_v6 = vpop.f32.mrb[67].mxu0  ;;  %941 = vmatprep.subr.bf16.mxu1 %v940_v2 }
 0x1bf   :  { %943 = vmatpush3.bf16.xpose.msra.mxu1 %v1176_v35  ;;  %v1073_v35 = vmov 0.0  }
 0x1c0   :  { %v555_v7 = vmul.f32 0.2, %v503_v5  ;;  %944 = vmatprep.subr.bf16.mxu1 %v1071_v8  ;;  %v592_v23 = vmax.f32 %v500_v0, %v554_v17  ;;  %87 = vst.msk [vmem:[#allocation2] sm:$0x1] %vm86_vm1, %v1073_v35 }
 0x1c2   :  { %v593_v9 = vmax.f32 %v503_v5, %v555_v7  ;;  %v760_v7 = vand.u32 127, %v759_v45 }
 0x1c3   :  { %v507_v11 = vpop.f32.mrb[68].mxu0 }
 0x1c4   :  { %v945_v12 = vpack.c.bf16 %v593_v9, %v592_v23  ;;  %v508_v13 = vadd.f32 %v1137_v3, %v507_v11  ;;  %v509_v14 = vpop.f32.mrb[69].mxu0  ;;  %v762_v23 = vadd.s32 256, %v760_v7 }
 0x1c5   :  { %v510_v15 = vpop.f32.mrb[70].mxu0 }
 0x1c6   :  { %v556_v29 = vmul.f32 0.2, %v508_v13  ;;  %v511_v16 = vadd.f32 %v1137_v3, %v510_v15  ;;  %v512_v19 = vpop.f32.mrb[71].mxu0  ;;  %889 = vmatmul.mubr.f32.vlgmr.msra.gmra.mrb[0].mxu1 %v1147_v18  ;;  %vm769_vm3 = vcmp.lt.s32.totalorder %v762_v23, 300 }
 0x1c7   :  { %946 = vmatpush3.bf16.xpose.msra.mxu1 %v945_v12  ;;  %909 = vmatprep.mubr.msk.f32.mxu1 %vm1072_vm0, %v1073_v35 }
 0x1c8   :  { %v557_v20 = vmul.f32 0.2, %v511_v16  ;;  %947 = vmatprep.subr.bf16.mxu1 %v1071_v8  ;;  %v594_v21 = vmax.f32 %v508_v13, %v556_v29 }
 0x1ca   :  { %v595_v22 = vmax.f32 %v511_v16, %v557_v20  ;;  %v793_v16 = vld [vmem:[#allocation2] sm:$0x1] }
 0x1cb   :  { %v515_v24 = vpop.f32.mrb[72].mxu0 }
 0x1cc   :  { %v948_v25 = vpack.c.bf16 %v595_v22, %v594_v21  ;;  %v516_v26 = vadd.f32 %v1137_v3, %v515_v24  ;;  %v517_v27 = vpop.f32.mrb[73].mxu0 }
 0x1cd   :  { %v518_v28 = vpop.f32.mrb[74].mxu0 }
 0x1ce   :  { %v558_v40 = vmul.f32 0.2, %v516_v26  ;;  %v519_v30 = vadd.f32 %v1137_v3, %v518_v28  ;;  %v520_v31 = vpop.f32.mrb[75].mxu0 }
 0x1cf   :  { %949 = vmatpush3.bf16.xpose.msra.mxu1 %v948_v25 }
 0x1d0   :  { %v559_v32 = vmul.f32 0.2, %v519_v30  ;;  %950 = vmatprep.subr.bf16.mxu1 %v1071_v8  ;;  %v596_v33 = vmax.f32 %v516_v26, %v558_v40  ;;  %v782_v8 = vsub.s32 2, %v773_v49 }
 0x1d2   :  { %v597_v34 = vmax.f32 %v519_v30, %v559_v32  ;;  %v783_v9 = vrot.slane %v770_v62, %v782_v8 }
 0x1d4   :  { %v951_v36 = vpack.c.bf16 %v597_v34, %v596_v33 }
 0x1d7   :  { %952 = vmatpush3.bf16.xpose.msra.mxu1 %v951_v36 }
 0x1de   :  { %910 = vmatmul.mubr.f32.vlgmr.msra.gmra.mrb[2].mxu1 %v1147_v18 }
 0x299   :  { %v667_v38 = vpop.f32.mrb[0].mxu1 }
 0x29a   :  { %v668_v39 = vadd.f32 %v667_v38, %v600_v37  ;;  %v669_v3 = vpop.f32.mrb[1].mxu1 }
 0x29b   :  { %v670_v41 = vadd.f32 %v669_v3, %v600_v37 }
 0x29c   :  { %v742_v51 = vsub.f32 0.0, %v668_v39 }
 0x29d   :  { %v743_v42 = vsub.f32 0.0, %v670_v41 }
 0x29e   :  { %v745_v43 = vmul.f32 1.442695, %v742_v51 }
 0x29f   :  { %v747_v44 = vmul.f32 1.442695, %v743_v42 }
 0x2a0   :  { %980 = vpow2.f32 %v745_v43 }
 0x2a1   :  { %982 = vpow2.f32 %v747_v44 }
 0x2aa   :  { %v981_v46 = vpop.eup %980 }
 0x2ab   :  { %v983_v18 = vpop.eup %982  ;;  %v751_v47 = vadd.f32 1.0, %v981_v46 }
 0x2ac   :  { %v752_v48 = vadd.f32 1.0, %v983_v18 }
 0x2ad   :  { %984 = vrcp.f32 %v751_v47 }
 0x2ae   :  { %986 = vrcp.f32 %v752_v48 }
 0x2b1   :  { %v738_v52 = vpop.f32.mrb[2].mxu1 }
 0x2b2   :  { %v739_v54 = vadd.f32 %v738_v52, %v600_v37  ;;  %v911_v55 = vpop.f32.mrb[3].mxu1 }
 0x2b4   :  { %v744_v56 = vsub.f32 0.0, %v739_v54 }
 0x2b6   :  { %v749_v59 = vmul.f32 1.442695, %v744_v56 }
 0x2b7   :  { %v985_v60 = vpop.eup %984 }
 0x2b8   :  { %v987_v61 = vpop.eup %986  ;;  %988 = vpow2.f32 %v749_v59  ;;  %v787_v63 = vsub.f32 %v985_v60, %v775_v57 }
 0x2b9   :  { %v788_v10 = vsub.f32 %v987_v61, %v779_v58 }
 0x2ba   :  { %v794_v0 = vmul.f32 %v787_v63, %v787_v63 }
 0x2bb   :  { %v795_v1 = vmul.f32 %v788_v10, %v788_v10 }
 0x2bc   :  { %v798_v2 = vsel %vm797_vm2, %v794_v0, 0.0 }
 0x2bd   :  { %v799_v4 = vsel %vm797_vm2, %v795_v1, 0.0 }
 0x2be   :  { %v800_v17 = vadd.f32 %v799_v4, %v798_v2 }
 0x2c2   :  { %v989_v5 = vpop.eup %988 }
 0x2c3   :  { %v753_v6 = vadd.f32 1.0, %v989_v5 }
 0x2c5   :  { %990 = vrcp.f32 %v753_v6 }
 0x2cf   :  { %v991_v11 = vpop.eup %990 }
 0x2d0   :  { %v789_v12 = vsub.f32 %v991_v11, %v783_v9 }
 0x2d2   :  { %v792_v13 = vsel %vm769_vm3, %v789_v12, 0.0 }
 0x2d3   :  { %v796_v14 = vmul.f32 %v792_v13, %v792_v13 }
 0x2d5   :  { %v802_v15 = vsel %vm801_vm4, %v796_v14, 0.0 }
 0x2d6   :  { %v803_v29 = vadd.f32 %v802_v15, %v800_v17 }
 0x2d8   :  { %804 = vadd.xlane.f32.xlu0 %v803_v29 }
 0x365   :  { %v805_v19 = vpop.xlane.xlu0 %804 }
 0x366   :  { %v806_v35 = vadd.f32 %v805_v19, %v793_v16 }
 0x368   :  { %808 = vst.msk [vmem:[#allocation2] sm:$0x1] %vm86_vm1, %v806_v35 }
 0x36f   :  { %v812_v20 = vld [vmem:[#allocation2] sm:$0x1] }
 0x370   :  { %v813_v21 = vmul.f32 0.0033333334, %v812_v20 }
 0x372   :  { %814 = vst.msk [vmem:[#allocation9] sm:$0x1] %vm86_vm1, %v813_v21 }
 0x373   :  { %1047 = shalt.err (!%p1044_p6)
}
 0x374   :  { %s1048_s9 = scalar_lea.hbm %s1236_s6, 16 }
 0x375   :  { %p1049_p7 = scmp.ne.s32.totalorder %s1236_s6, %s1048_s9  ;;  %p1052_p8 = scmp.lt.u32.totalorder %s1048_s9, %s1236_s6 }
 0x377   :  { %p1054_p9 = pnand %p1052_p8, %p1049_p7 }
 0x379   :  { %1057 = shalt.err (!%p1054_p9)
}
 0x37a   :  { %824 = dma.vmem_to_hbm [thread:$0]  %s822_s28, 16, %s1236_s6, [#allocation6]  }
 0x37b   :  { %1062 = dma.done.wait [#allocation6], 16  }
 0x37c   :  { %1063 = vsyncadd [#allocation6], 4294967280 }
 0x37d   :  { %828 = vsyncpa [#allocation5], 1 }
 0x37e   :  { %829 = vsyncpa [#allocation8], 1 }
 0x37f   :  { %830 = vsyncpa [#allocation6], 1 }

</bundles_post_ra>
